<compile_context>
chip_gen: v7x
topology: tpu7x:2x2x1
jax: 0.10.0
libtpu: 0.0.40
codegen_flags: <defaults>
</compile_context>

<pallas_src>
import functools

import jax
import jax.numpy as jnp
from jax.experimental import pallas as pl
from jax.experimental.pallas import tpu as pltpu


def _round_up(x, m):
    return ((x + m - 1) // m) * m


def _tpu_config():
    """Return (default block_b, vmem_limit_bytes, min_tiles) for this TPU gen."""
    vmem_bytes = 128 * 1024 * 1024
    try:
        info = pltpu.get_tpu_info()
        vmem_bytes = int(getattr(info, "vmem_capacity_bytes", vmem_bytes))
    except Exception:
        # Unknown hardware / old jax: fall back to the conservative (v7x) path.
        vmem_bytes = 64 * 1024 * 1024
    if vmem_bytes <= 64 * 1024 * 1024:
        # v7x-class: 64 MiB VMEM per TensorCore, 2 TensorCores per chip.
        return 1024, 40 * 1024 * 1024, 2
    # v5e / v6e: 128 MiB physical VMEM, single TensorCore.
    return 2048, 96 * 1024 * 1024, 1


def _mish(x):
    # mish(x) = x * tanh(softplus(x)) = x * ((1+e^x)^2 - 1) / ((1+e^x)^2 + 1)
    # One exp (EUP) + VPU arithmetic + one approx EUP reciprocal.
    e = jnp.exp(jnp.minimum(x, 20.0))          # clamp: avoid f32 overflow of exp
    n = (1.0 + e) * (1.0 + e)
    y = x * (n - 1.0) * pl.reciprocal(n + 1.0, approx=True)
    # For x > 20, tanh(softplus(x)) == 1 to float precision -> mish(x) == x.
    return jnp.where(x > 20.0, x, y)


def _mlp_kernel(x_ref, w1_ref, b1_ref, w2_ref, b2_ref, w3_ref, b3_ref, o_ref):
    # x already bf16 (cast in the wrapper); matmuls bf16-in, f32-accumulate.
    x = x_ref[...]
    h1 = jnp.dot(x, w1_ref[...], preferred_element_type=jnp.float32)
    h1 = _mish(h1 + b1_ref[...])
    h2 = jnp.dot(h1.astype(jnp.bfloat16), w2_ref[...],
                 preferred_element_type=jnp.float32)
    h2 = _mish(h2 + b2_ref[...])
    out = jnp.dot(h2.astype(jnp.bfloat16), w3_ref[...],
                  preferred_element_type=jnp.float32)
    o_ref[...] = (out + b3_ref[...]).astype(o_ref.dtype)


@functools.partial(jax.jit, static_argnames=("block_b", "out_dtype"))
def mlp_forward(env, params, *, block_b=None, out_dtype=jnp.float32):
    """env: [B, 2*obs_dim] float32; params: dict (w1,b1,w2,b2,w3,b3) -> [B, embed_dim].

    Weights are stored [in, out] (transposed vs. torch Linear) and fed to the
    MXU in bf16; biases and elementwise math stay f32. out_dtype=bfloat16 is an
    optional numerics/interface change that roughly halves output HBM bytes.
    """
    dflt_block_b, vmem_limit, min_tiles = _tpu_config()
    if block_b is None:
        block_b = dflt_block_b

    w1 = params["w1"].astype(jnp.bfloat16)
    w2 = params["w2"].astype(jnp.bfloat16)
    w3 = params["w3"].astype(jnp.bfloat16)
    b1, b2, b3 = params["b1"], params["b2"], params["b3"]

    B, in_dim = env.shape
    hid = w1.shape[1]
    embed_dim = w3.shape[1]

    # --- batch tiling --------------------------------------------------------
    # Split B evenly across tiles (rounded to 16 rows for bf16 sublane packing)
    # rather than padding to a multiple of block_b.  On v7x force an even
    # number of >= 2 tiles (when there is enough work) so both TensorCores run.
    n_tiles = pl.cdiv(B, block_b)
    if min_tiles > 1 and B >= min_tiles * 16:
        n_tiles = _round_up(max(n_tiles, min_tiles), min_tiles)
    tile_b = max(16, _round_up(pl.cdiv(B, n_tiles), 16))
    B_pad = n_tiles * tile_b

    env = env.astype(jnp.bfloat16)               # halve x HBM->VMEM traffic
    if B_pad != B:
        env = jnp.pad(env, ((0, B_pad - B), (0, 0)))

    const2d = lambda i: (0, 0)
    out_isize = jnp.dtype(out_dtype).itemsize

    cost = pl.CostEstimate(
        flops=2 * B_pad * (in_dim * hid + hid * hid + hid * embed_dim),
        transcendentals=4 * B_pad * hid,   # (exp + approx rcp) per hidden elem, 2 layers
        bytes_accessed=(env.size * 2 + B_pad * embed_dim * out_isize
                        + (w1.size + w2.size + w3.size) * 2
                        + (b1.size + b2.size + b3.size) * 4),
    )

    out = pl.pallas_call(
        _mlp_kernel,
        out_shape=jax.ShapeDtypeStruct((B_pad, embed_dim), out_dtype),
        grid=(n_tiles,),
        in_specs=[
            pl.BlockSpec((tile_b, in_dim), lambda i: (i, 0)),   # x: batch-tiled
            pl.BlockSpec(w1.shape, const2d),                    # weights/biases stay
            pl.BlockSpec(b1.shape, const2d),                    #   VMEM-resident
            pl.BlockSpec(w2.shape, const2d),
            pl.BlockSpec(b2.shape, const2d),
            pl.BlockSpec(w3.shape, const2d),
            pl.BlockSpec(b3.shape, const2d),
        ],
        # No 128-lane zero-pad of embed_dim: block last dim equals the full
        # array dim (legal), halving output writes and avoiding the extra
        # post-kernel slice copy that pad+slice would add.
        out_specs=pl.BlockSpec((tile_b, embed_dim), lambda i: (i, 0)),
        compiler_params=pltpu.CompilerParams(
            dimension_semantics=("parallel",),   # shard batch across TCs (v7x)
            vmem_limit_bytes=vmem_limit,         # generation-aware scoped limit
        ),
        cost_estimate=cost,
    )(env, w1, b1, w2, b2, w3, b3)

    if B_pad != B:
        out = out[:B]
    return out


def init_params(key, obs_dim, embed_dim=64):
    """Layer shapes matching the torch module; weights stored [in, out]."""
    in_dim = 2 * obs_dim
    dims = [(in_dim, 256), (256, 256), (256, embed_dim)]
    params = {}
    for i, (din, dout) in enumerate(dims, start=1):
        key, kw, kb = jax.random.split(key, 3)
        bound = 1.0 / jnp.sqrt(din)              # torch default Linear init scale
        params[f"w{i}"] = jax.random.uniform(
            kw, (din, dout), jnp.float32, minval=-bound, maxval=bound)
        params[f"b{i}"] = jax.random.uniform(
            kb, (1, dout), jnp.float32, minval=-bound, maxval=bound)
    return params


def _reference(env, params):
    # Pure-JAX reference; env/activations/weights rounded through bf16 to
    # mirror the kernel's MXU inputs (accumulation stays f32).
    def mish(x):
        return x * jnp.tanh(jax.nn.softplus(x))
    r = lambda a: a.astype(jnp.bfloat16).astype(jnp.float32)
    h = mish(r(env) @ r(params["w1"]) + params["b1"])
    h = mish(r(h) @ r(params["w2"]) + params["b2"])
    return r(h) @ r(params["w3"]) + params["b3"]


if __name__ == "__main__":
    obs_dim, embed_dim = 8, 64
    key = jax.random.PRNGKey(0)
    params = init_params(key, obs_dim, embed_dim)

    # B=2: tiny-batch path; B=40: exercises row padding / v7x two-tile split.
    for B in (2, 40):
        kx = jax.random.fold_in(key, B)
        env = jax.random.normal(kx, (B, 2 * obs_dim), dtype=jnp.float32)
        out = jax.block_until_ready(mlp_forward(env, params))
        ref = _reference(env, params)
        assert out.shape == (B, embed_dim), out.shape
        # bf16 matmul inputs + approx reciprocal in Mish -> relaxed tolerance.
        assert jnp.allclose(out, ref, atol=2e-2, rtol=2e-2), f"mismatch at B={B}"

    print("KERNEL_OK")
</pallas_src>

<mosaic_0001>
module attributes {stable_mosaic.version = 11 : i64} {
  func.func @_mlp_kernel(%arg0: i32, %arg1: memref<16x16xbf16, #tpu.memory_space<vmem>>, %arg2: memref<16x256xbf16, #tpu.memory_space<vmem>>, %arg3: memref<1x256xf32, #tpu.memory_space<vmem>>, %arg4: memref<256x256xbf16, #tpu.memory_space<vmem>>, %arg5: memref<1x256xf32, #tpu.memory_space<vmem>>, %arg6: memref<256x64xbf16, #tpu.memory_space<vmem>>, %arg7: memref<1x64xf32, #tpu.memory_space<vmem>>, %arg8: memref<16x64xf32, #tpu.memory_space<vmem>>) attributes {dimension_semantics = [#tpu.dimension_semantics<parallel>], iteration_bounds = array<i64: 1>, scalar_prefetch = 0 : i64, scratch_operands = 0 : i64, tpu.core_type = #tpu.core_type<tc>, window_params = [{transform_indices = @transform_0, window_bounds = array<i64: 16, 16>}, {pipeline_mode = #tpu.pipeline_mode<synchronous>, transform_indices = @transform_1, window_bounds = array<i64: 16, 256>}, {pipeline_mode = #tpu.pipeline_mode<synchronous>, transform_indices = @transform_2, window_bounds = array<i64: 1, 256>}, {pipeline_mode = #tpu.pipeline_mode<synchronous>, transform_indices = @transform_3, window_bounds = array<i64: 256, 256>}, {pipeline_mode = #tpu.pipeline_mode<synchronous>, transform_indices = @transform_4, window_bounds = array<i64: 1, 256>}, {pipeline_mode = #tpu.pipeline_mode<synchronous>, transform_indices = @transform_5, window_bounds = array<i64: 256, 64>}, {pipeline_mode = #tpu.pipeline_mode<synchronous>, transform_indices = @transform_6, window_bounds = array<i64: 1, 64>}, {transform_indices = @transform_7, window_bounds = array<i64: 16, 64>}]} {
    %c0 = arith.constant 0 : index
    %c0_0 = arith.constant 0 : index
    %0 = vector.load %arg1[%c0, %c0_0] : memref<16x16xbf16, #tpu.memory_space<vmem>>, vector<16x16xbf16>
    %c0_1 = arith.constant 0 : index
    %c0_2 = arith.constant 0 : index
    %1 = vector.load %arg2[%c0_1, %c0_2] : memref<16x256xbf16, #tpu.memory_space<vmem>>, vector<16x256xbf16>
    %cst = arith.constant dense<0.000000e+00> : vector<16x256xf32>
    %2 = tpu.matmul %0, %1, %cst {dimension_numbers = #tpu.dot_dimension_numbers<[1], [0], [0], [1], [0, 0, 1, 1], [], []>} : vector<16x16xbf16>, vector<16x256xbf16>, vector<16x256xf32> -> vector<16x256xf32>
    %c0_3 = arith.constant 0 : index
    %c0_4 = arith.constant 0 : index
    %3 = vector.load %arg3[%c0_3, %c0_4] : memref<1x256xf32, #tpu.memory_space<vmem>>, vector<1x256xf32>
    %4 = vector.broadcast %3 : vector<1x256xf32> to vector<16x256xf32>
    %5 = arith.addf %2, %4 : vector<16x256xf32>
    %cst_5 = arith.constant 2.000000e+01 : f32
    %6 = vector.broadcast %cst_5 : f32 to vector<16x256xf32>
    %7 = arith.minimumf %5, %6 : vector<16x256xf32>
    %8 = math.exp %7 : vector<16x256xf32>
    %cst_6 = arith.constant 1.000000e+00 : f32
    %9 = vector.broadcast %cst_6 : f32 to vector<16x256xf32>
    %10 = arith.addf %9, %8 : vector<16x256xf32>
    %cst_7 = arith.constant 1.000000e+00 : f32
    %11 = vector.broadcast %cst_7 : f32 to vector<16x256xf32>
    %12 = arith.addf %11, %8 : vector<16x256xf32>
    %13 = arith.mulf %10, %12 : vector<16x256xf32>
    %cst_8 = arith.constant 1.000000e+00 : f32
    %14 = vector.broadcast %cst_8 : f32 to vector<16x256xf32>
    %15 = arith.subf %13, %14 : vector<16x256xf32>
    %16 = arith.mulf %5, %15 : vector<16x256xf32>
    %cst_9 = arith.constant 1.000000e+00 : f32
    %17 = vector.broadcast %cst_9 : f32 to vector<16x256xf32>
    %18 = arith.addf %13, %17 : vector<16x256xf32>
    %19 = tpu.reciprocal %18 {approx = true} : vector<16x256xf32> -> vector<16x256xf32>
    %20 = arith.mulf %16, %19 : vector<16x256xf32>
    %cst_10 = arith.constant 2.000000e+01 : f32
    %21 = vector.broadcast %cst_10 : f32 to vector<16x256xf32>
    %22 = arith.cmpf ogt, %5, %21 : vector<16x256xf32>
    %23 = arith.select %22, %5, %20 : vector<16x256xi1>, vector<16x256xf32>
    %24 = arith.truncf %23 : vector<16x256xf32> to vector<16x256xbf16>
    %c0_11 = arith.constant 0 : index
    %c0_12 = arith.constant 0 : index
    %25 = vector.load %arg4[%c0_11, %c0_12] : memref<256x256xbf16, #tpu.memory_space<vmem>>, vector<256x256xbf16>
    %cst_13 = arith.constant dense<0.000000e+00> : vector<16x256xf32>
    %26 = tpu.matmul %24, %25, %cst_13 {dimension_numbers = #tpu.dot_dimension_numbers<[1], [0], [0], [1], [0, 0, 1, 1], [], []>} : vector<16x256xbf16>, vector<256x256xbf16>, vector<16x256xf32> -> vector<16x256xf32>
    %c0_14 = arith.constant 0 : index
    %c0_15 = arith.constant 0 : index
    %27 = vector.load %arg5[%c0_14, %c0_15] : memref<1x256xf32, #tpu.memory_space<vmem>>, vector<1x256xf32>
    %28 = vector.broadcast %27 : vector<1x256xf32> to vector<16x256xf32>
    %29 = arith.addf %26, %28 : vector<16x256xf32>
    %cst_16 = arith.constant 2.000000e+01 : f32
    %30 = vector.broadcast %cst_16 : f32 to vector<16x256xf32>
    %31 = arith.minimumf %29, %30 : vector<16x256xf32>
    %32 = math.exp %31 : vector<16x256xf32>
    %cst_17 = arith.constant 1.000000e+00 : f32
    %33 = vector.broadcast %cst_17 : f32 to vector<16x256xf32>
    %34 = arith.addf %33, %32 : vector<16x256xf32>
    %cst_18 = arith.constant 1.000000e+00 : f32
    %35 = vector.broadcast %cst_18 : f32 to vector<16x256xf32>
    %36 = arith.addf %35, %32 : vector<16x256xf32>
    %37 = arith.mulf %34, %36 : vector<16x256xf32>
    %cst_19 = arith.constant 1.000000e+00 : f32
    %38 = vector.broadcast %cst_19 : f32 to vector<16x256xf32>
    %39 = arith.subf %37, %38 : vector<16x256xf32>
    %40 = arith.mulf %29, %39 : vector<16x256xf32>
    %cst_20 = arith.constant 1.000000e+00 : f32
    %41 = vector.broadcast %cst_20 : f32 to vector<16x256xf32>
    %42 = arith.addf %37, %41 : vector<16x256xf32>
    %43 = tpu.reciprocal %42 {approx = true} : vector<16x256xf32> -> vector<16x256xf32>
    %44 = arith.mulf %40, %43 : vector<16x256xf32>
    %cst_21 = arith.constant 2.000000e+01 : f32
    %45 = vector.broadcast %cst_21 : f32 to vector<16x256xf32>
    %46 = arith.cmpf ogt, %29, %45 : vector<16x256xf32>
    %47 = arith.select %46, %29, %44 : vector<16x256xi1>, vector<16x256xf32>
    %48 = arith.truncf %47 : vector<16x256xf32> to vector<16x256xbf16>
    %c0_22 = arith.constant 0 : index
    %c0_23 = arith.constant 0 : index
    %49 = vector.load %arg6[%c0_22, %c0_23] : memref<256x64xbf16, #tpu.memory_space<vmem>>, vector<256x64xbf16>
    %cst_24 = arith.constant dense<0.000000e+00> : vector<16x64xf32>
    %50 = tpu.matmul %48, %49, %cst_24 {dimension_numbers = #tpu.dot_dimension_numbers<[1], [0], [0], [1], [0, 0, 1, 1], [], []>} : vector<16x256xbf16>, vector<256x64xbf16>, vector<16x64xf32> -> vector<16x64xf32>
    %c0_25 = arith.constant 0 : index
    %c0_26 = arith.constant 0 : index
    %51 = vector.load %arg7[%c0_25, %c0_26] : memref<1x64xf32, #tpu.memory_space<vmem>>, vector<1x64xf32>
    %52 = vector.broadcast %51 : vector<1x64xf32> to vector<16x64xf32>
    %53 = arith.addf %50, %52 : vector<16x64xf32>
    %c0_27 = arith.constant 0 : index
    %c0_28 = arith.constant 0 : index
    %54 = vector.load %arg8[%c0_27, %c0_28] : memref<16x64xf32, #tpu.memory_space<vmem>>, vector<16x64xf32>
    tpu.vector_store %arg8[%c0_27, %c0_28], %53 {strides = array<i32>} : memref<16x64xf32, #tpu.memory_space<vmem>>, vector<16x64xf32>,
    return
  }
  func.func @transform_0(%arg0: i32) -> (i32, i32) {
    %c0_i32 = arith.constant 0 : i32
    %c0_i32_0 = arith.constant 0 : i32
    return %arg0, %c0_i32 : i32, i32
  }
  func.func @transform_1(%arg0: i32) -> (i32, i32) {
    %c0_i32 = arith.constant 0 : i32
    %c0_i32_0 = arith.constant 0 : i32
    %c0_i32_1 = arith.constant 0 : i32
    return %c0_i32, %c0_i32_0 : i32, i32
  }
  func.func @transform_2(%arg0: i32) -> (i32, i32) {
    %c0_i32 = arith.constant 0 : i32
    %c0_i32_0 = arith.constant 0 : i32
    %c0_i32_1 = arith.constant 0 : i32
    return %c0_i32, %c0_i32_0 : i32, i32
  }
  func.func @transform_3(%arg0: i32) -> (i32, i32) {
    %c0_i32 = arith.constant 0 : i32
    %c0_i32_0 = arith.constant 0 : i32
    %c0_i32_1 = arith.constant 0 : i32
    return %c0_i32, %c0_i32_0 : i32, i32
  }
  func.func @transform_4(%arg0: i32) -> (i32, i32) {
    %c0_i32 = arith.constant 0 : i32
    %c0_i32_0 = arith.constant 0 : i32
    %c0_i32_1 = arith.constant 0 : i32
    return %c0_i32, %c0_i32_0 : i32, i32
  }
  func.func @transform_5(%arg0: i32) -> (i32, i32) {
    %c0_i32 = arith.constant 0 : i32
    %c0_i32_0 = arith.constant 0 : i32
    %c0_i32_1 = arith.constant 0 : i32
    return %c0_i32, %c0_i32_0 : i32, i32
  }
  func.func @transform_6(%arg0: i32) -> (i32, i32) {
    %c0_i32 = arith.constant 0 : i32
    %c0_i32_0 = arith.constant 0 : i32
    %c0_i32_1 = arith.constant 0 : i32
    return %c0_i32, %c0_i32_0 : i32, i32
  }
  func.func @transform_7(%arg0: i32) -> (i32, i32) {
    %c0_i32 = arith.constant 0 : i32
    %c0_i32_0 = arith.constant 0 : i32
    return %arg0, %c0_i32 : i32, i32
  }
}

</mosaic_0001>

<bundles_post_ra>
// kernel: mlp_forward.1
= control target key start
LH: loop header
LB: loop body
LE: loop exit
PB: predicated region body
PF: predicated region fallthrough
CT: control target
= control target key end

     0   :  { %v819_v1 = vmov 0   ;;  %vm58_vm0 = vcmask 130048   ;;  %v33_v36 = vlaneseq  ;;  %vm628_vm9 = vcmask 523264   ;;  %s1040_s1 = inlined_call_operand.vmem [shape: bf16[16,256], index: 1, kind: input, shape index: {}]   ;;  %s1041_s0 = inlined_call_operand.vmem [shape: bf16[16,16], index: 0, kind: input, shape index: {}]   ;;  %s1042_s3 = inlined_call_operand.vmem [shape: bf16[256,256], index: 3, kind: input, shape index: {}]   ;;  %s1043_s2 = inlined_call_operand.vmem [shape: f32[1,256], index: 2, kind: input, shape index: {}]   ;;  %s1044_s5 = inlined_call_operand.vmem [shape: bf16[256,64], index: 5, kind: input, shape index: {}]   ;;  %s1045_s4 = inlined_call_operand.vmem [shape: f32[1,256], index: 4, kind: input, shape index: {}]   ;;  %s1046_s6 = inlined_call_operand.vmem [shape: f32[1,64], index: 6, kind: input, shape index: {}]   ;;  %s1047_s7 = inlined_call_operand.vmem [shape: f32[16,64], index: 7, kind: output, shape index: {}]  }
   0x1   :  { %v719_v0 = vld [vmem:[%s1040_s1 + $0x4] ss:$8 sps:$4 sm:$0xff]   ;;  %94 = vmatprep.mubr.bf16.mxu0 %v819_v1  ;;  %v721_v2 = vld [vmem:[%s1040_s1] ss:$8 sps:$4 sm:$0xff]   ;;  %v726_v6 = vld [vmem:[%s1042_s3 + $0x14] ss:$8 sps:$4 sm:$0xff]  }
   0x2   :  { %62 = vmatprep.subr.bf16.mxu0 %v719_v0  ;;  %v722_v3 = vld [vmem:[%s1041_s0] sm:$0xff]   ;;  %v728_v7 = vld [vmem:[%s1042_s3 + $0x10] ss:$8 sps:$4 sm:$0xff]   ;;  %v732_v10 = vld [vmem:[%s1042_s3 + $0x34] ss:$8 sps:$4 sm:$0xff]   ;;  %v965_v37 = vshrl.u32 %v33_v36, 7 }
   0x3   :  { %63 = vmatpush1.bf16.msra.mxu0 %v721_v2  ;;  %v723_v4 = vld [vmem:[%s1042_s3 + $0x4] ss:$8 sps:$4 sm:$0xff]   ;;  %v725_v5 = vld [vmem:[%s1042_s3] ss:$8 sps:$4 sm:$0xff]   ;;  %v734_v11 = vld [vmem:[%s1042_s3 + $0x30] ss:$8 sps:$4 sm:$0xff]  }
   0x4   :  { %359 = vmatprep.subr.bf16.mxu1 %v723_v4  ;;  %v729_v8 = vld [vmem:[%s1042_s3 + $0x24] ss:$8 sps:$4 sm:$0xff]   ;;  %v731_v9 = vld [vmem:[%s1042_s3 + $0x20] ss:$8 sps:$4 sm:$0xff]   ;;  %v738_v14 = vld [vmem:[%s1042_s3 + $0x54] ss:$8 sps:$4 sm:$0xff]  }
   0x5   :  { %360 = vmatpush1.bf16.msra.mxu1 %v725_v5  ;;  %v735_v12 = vld [vmem:[%s1042_s3 + $0x44] ss:$8 sps:$4 sm:$0xff]   ;;  %v737_v13 = vld [vmem:[%s1042_s3 + $0x40] ss:$8 sps:$4 sm:$0xff]   ;;  %v740_v15 = vld [vmem:[%s1042_s3 + $0x50] ss:$8 sps:$4 sm:$0xff]  }
   0x6   :  { %638 = vmatmul.mubr.msk.bf16.vlgmr.msra.gmra.mrb[0].mxu0 %vm58_vm0, %v722_v3  ;;  %361 = vmatprep.subr.bf16.mxu1 %v726_v6  ;;  %v741_v16 = vld [vmem:[%s1042_s3 + $0x64] ss:$8 sps:$4 sm:$0xff]   ;;  %v743_v17 = vld [vmem:[%s1042_s3 + $0x60] ss:$8 sps:$4 sm:$0xff]   ;;  %v744_v18 = vld [vmem:[%s1042_s3 + $0x74] ss:$8 sps:$4 sm:$0xff]  }
   0x7   :  { %v746_v19 = vld [vmem:[%s1042_s3 + $0x70] ss:$8 sps:$4 sm:$0xff]   ;;  %v747_v20 = vld [vmem:[%s1042_s3 + $0x84] ss:$8 sps:$4 sm:$0xff]   ;;  %v749_v21 = vld [vmem:[%s1042_s3 + $0x80] ss:$8 sps:$4 sm:$0xff]  }
   0x8   :  { %v750_v22 = vld [vmem:[%s1042_s3 + $0x94] ss:$8 sps:$4 sm:$0xff]   ;;  %v752_v23 = vld [vmem:[%s1042_s3 + $0x90] ss:$8 sps:$4 sm:$0xff]   ;;  %v753_v24 = vld [vmem:[%s1042_s3 + $0xa4] ss:$8 sps:$4 sm:$0xff]  }
   0x9   :  { %362 = vmatpush1.bf16.msra.mxu1 %v728_v7  ;;  %v755_v25 = vld [vmem:[%s1042_s3 + $0xa0] ss:$8 sps:$4 sm:$0xff]   ;;  %v756_v26 = vld [vmem:[%s1042_s3 + $0xb4] ss:$8 sps:$4 sm:$0xff]   ;;  %v758_v27 = vld [vmem:[%s1042_s3 + $0xb0] ss:$8 sps:$4 sm:$0xff]  }
   0xa   :  { %363 = vmatprep.subr.bf16.mxu1 %v729_v8  ;;  %v759_v28 = vld [vmem:[%s1042_s3 + $0xc4] ss:$8 sps:$4 sm:$0xff]   ;;  %v761_v29 = vld [vmem:[%s1042_s3 + $0xc0] ss:$8 sps:$4 sm:$0xff]   ;;  %v762_v30 = vld [vmem:[%s1042_s3 + $0xd4] ss:$8 sps:$4 sm:$0xff]  }
   0xb   :  { %v764_v31 = vld [vmem:[%s1042_s3 + $0xd0] ss:$8 sps:$4 sm:$0xff]   ;;  %v765_v32 = vld [vmem:[%s1042_s3 + $0xe4] ss:$8 sps:$4 sm:$0xff]   ;;  %v767_v33 = vld [vmem:[%s1042_s3 + $0xe0] ss:$8 sps:$4 sm:$0xff]  }
   0xc   :  { %v768_v34 = vld [vmem:[%s1042_s3 + $0xf4] ss:$8 sps:$4 sm:$0xff]   ;;  %v770_v35 = vld [vmem:[%s1042_s3 + $0xf0] ss:$8 sps:$4 sm:$0xff]   ;;  %v35_v38 = vsub.s32 0, %v965_v37  ;;  %v39_v40 = vsub.s32 1, %v965_v37 }
   0xd   :  { %364 = vmatpush1.bf16.msra.mxu1 %v731_v9  ;;  %v31_v39 = vld [vmem:[%s1043_s2] sm:$0x3]  ;;  %v774_v36 = vld [vmem:[%s1044_s5 + $0x8] sm:$0xff]  }
   0xe   :  { %365 = vmatprep.subr.bf16.mxu1 %v732_v10  ;;  %v36_v41 = vrot.slane %v31_v39, %v35_v38  ;;  %v40_v42 = vrot.slane %v31_v39, %v39_v40  ;;  %v775_v39 = vld [vmem:[%s1044_s5 + $0x50] sm:$0xff]  }
  0x11   :  { %366 = vmatpush1.bf16.msra.mxu1 %v734_v11 }
  0x12   :  { %367 = vmatprep.subr.bf16.mxu1 %v735_v12 }
  0x15   :  { %368 = vmatpush1.bf16.msra.mxu1 %v737_v13 }
  0x16   :  { %369 = vmatprep.subr.bf16.mxu1 %v738_v14 }
  0x19   :  { %370 = vmatpush1.bf16.msra.mxu1 %v740_v15 }
  0x1a   :  { %371 = vmatprep.subr.bf16.mxu1 %v741_v16 }
  0x1d   :  { %372 = vmatpush1.bf16.msra.mxu1 %v743_v17 }
  0x1e   :  { %373 = vmatprep.subr.bf16.mxu1 %v744_v18 }
  0x21   :  { %374 = vmatpush1.bf16.msra.mxu1 %v746_v19 }
  0x22   :  { %375 = vmatprep.subr.bf16.mxu1 %v747_v20 }
  0x25   :  { %376 = vmatpush1.bf16.msra.mxu1 %v749_v21 }
  0x26   :  { %377 = vmatprep.subr.bf16.mxu1 %v750_v22 }
  0x29   :  { %378 = vmatpush1.bf16.msra.mxu1 %v752_v23 }
  0x2a   :  { %379 = vmatprep.subr.bf16.mxu1 %v753_v24 }
  0x2d   :  { %380 = vmatpush1.bf16.msra.mxu1 %v755_v25 }
  0x2e   :  { %381 = vmatprep.subr.bf16.mxu1 %v756_v26 }
  0x31   :  { %382 = vmatpush1.bf16.msra.mxu1 %v758_v27 }
  0x32   :  { %383 = vmatprep.subr.bf16.mxu1 %v759_v28 }
  0x35   :  { %384 = vmatpush1.bf16.msra.mxu1 %v761_v29 }
  0x36   :  { %385 = vmatprep.subr.bf16.mxu1 %v762_v30 }
  0x39   :  { %386 = vmatpush1.bf16.msra.mxu1 %v764_v31 }
  0x3a   :  { %387 = vmatprep.subr.bf16.mxu1 %v765_v32 }
  0x3d   :  { %388 = vmatpush1.bf16.msra.mxu1 %v767_v33  ;;  %v771_v33 = vld [vmem:[%s1044_s5 + $0x40] sm:$0xff]  }
  0x3e   :  { %389 = vmatprep.subr.bf16.mxu1 %v768_v34  ;;  %v772_v34 = vld [vmem:[%s1044_s5] sm:$0xff]   ;;  %696 = vmatprep.subr.bf16.mxu0 %v771_v33 }
  0x3f   :  { %697 = vmatpush3.bf16.msra.mxu0 %v772_v34 }
  0x41   :  { %390 = vmatpush1.bf16.msra.mxu1 %v770_v35  ;;  %v773_v35 = vld [vmem:[%s1044_s5 + $0x48] sm:$0xff]  }
  0x42   :  { %698 = vmatprep.subr.bf16.mxu0 %v773_v35 }
  0x43   :  { %699 = vmatpush3.bf16.msra.mxu0 %v774_v36 }
  0x44   :  { %700 = vmatprep.subr.bf16.mxu0 %v775_v39 }
  0xd9   :  { %v96_v43 = vpop.f32.mrb[0].mxu0 }
  0xda   :  { %v97_v44 = vadd.f32 %v96_v43, %v36_v41  ;;  %v98_v45 = vpop.f32.mrb[1].mxu0  ;;  %v778_v43 = vld [vmem:[%s1044_s5 + $0x18] sm:$0xff]  }
  0xdb   :  { %v99_v46 = vadd.f32 %v98_v45, %v40_v42  ;;  %v100_v47 = vpop.f32.mrb[2].mxu0  ;;  %v780_v45 = vld [vmem:[%s1044_s5 + $0x20] sm:$0xff]  }
  0xdc   :  { %v105_v48 = vmin.f32 %v97_v44, 20.0  ;;  %v101_v49 = vadd.f32 %v100_v47, %v36_v41  ;;  %v102_v50 = vpop.f32.mrb[3].mxu0  ;;  %vm145_vm1 = vcmp.gt.f32.partialorder %v97_v44, 20.0  ;;  %v776_v41 = vld [vmem:[%s1044_s5 + $0x10] sm:$0xff]   ;;  %v782_v47 = vld [vmem:[%s1044_s5 + $0x28] sm:$0xff]  }
  0xdd   :  { %v106_v51 = vmin.f32 %v99_v46, 20.0  ;;  %v103_v52 = vadd.f32 %v102_v50, %v40_v42  ;;  %vm146_vm3 = vcmp.gt.f32.partialorder %v99_v46, 20.0  ;;  %701 = vmatpush3.bf16.msra.mxu0 %v776_v41  ;;  %v777_v42 = vld [vmem:[%s1044_s5 + $0x58] sm:$0xff]  }
  0xde   :  { %v109_v53 = vmul.f32 1.442695, %v105_v48  ;;  %v107_v54 = vmin.f32 %v101_v49, 20.0  ;;  %vm147_vm2 = vcmp.gt.f32.partialorder %v101_v49, 20.0  ;;  %702 = vmatprep.subr.bf16.mxu0 %v777_v42  ;;  %v783_v48 = vld [vmem:[%s1044_s5 + $0x70] sm:$0xff]   ;;  %v785_v50 = vld [vmem:[%s1044_s5 + $0x78] sm:$0xff]  }
  0xdf   :  { %v111_v55 = vmul.f32 1.442695, %v106_v51  ;;  %v108_v56 = vmin.f32 %v103_v52, 20.0  ;;  %vm148_vm4 = vcmp.gt.f32.partialorder %v103_v52, 20.0  ;;  %v786_v51 = vld [vmem:[%s1044_s5 + $0x38] sm:$0xff]  }
  0xe0   :  { %787 = vpow2.f32 %v109_v53  ;;  %v113_v57 = vmul.f32 1.442695, %v107_v54 }
  0xe1   :  { %789 = vpow2.f32 %v111_v55  ;;  %v115_v58 = vmul.f32 1.442695, %v108_v56  ;;  %703 = vmatpush3.bf16.msra.mxu0 %v778_v43 }
  0xe2   :  { %791 = vpow2.f32 %v113_v57 }
  0xe3   :  { %793 = vpow2.f32 %v115_v58 }
  0xea   :  { %v788_v59 = vpop.eup %787 }
  0xeb   :  { %v790_v60 = vpop.eup %789  ;;  %v117_v61 = vadd.f32 1.0, %v788_v59 }
  0xec   :  { %v792_v62 = vpop.eup %791  ;;  %v118_v63 = vadd.f32 1.0, %v790_v60 }
  0xed   :  { %v794_v0 = vpop.eup %793  ;;  %v121_v1 = vmul.f32 %v117_v61, %v117_v61  ;;  %v119_v2 = vadd.f32 1.0, %v792_v62 }
  0xee   :  { %v120_v3 = vadd.f32 1.0, %v794_v0  ;;  %v122_v4 = vmul.f32 %v118_v63, %v118_v63 }
  0xef   :  { %v133_v5 = vadd.f32 1.0, %v121_v1  ;;  %v123_v6 = vmul.f32 %v119_v2, %v119_v2  ;;  %v639_v11 = vadd.f32 -1.0, %v121_v1 }
  0xf0   :  { %v124_v7 = vmul.f32 %v120_v3, %v120_v3  ;;  %v134_v8 = vadd.f32 1.0, %v122_v4  ;;  %v640_v12 = vadd.f32 -1.0, %v122_v4 }
  0xf1   :  { %795 = vrcp.f32 %v133_v5  ;;  %v135_v9 = vadd.f32 1.0, %v123_v6  ;;  %v641_v13 = vadd.f32 -1.0, %v123_v6  ;;  %v129_v15 = vmul.f32 %v639_v11, %v97_v44 }
  0xf2   :  { %v136_v10 = vadd.f32 1.0, %v124_v7  ;;  %797 = vrcp.f32 %v134_v8  ;;  %v642_v14 = vadd.f32 -1.0, %v124_v7  ;;  %v130_v17 = vmul.f32 %v640_v12, %v99_v46 }
  0xf3   :  { %799 = vrcp.f32 %v135_v9  ;;  %v131_v19 = vmul.f32 %v641_v13, %v101_v49 }
  0xf4   :  { %801 = vrcp.f32 %v136_v10  ;;  %v132_v22 = vmul.f32 %v642_v14, %v103_v52 }
  0xfb   :  { %v796_v16 = vpop.eup %795 }
  0xfc   :  { %v798_v18 = vpop.eup %797  ;;  %v141_v20 = vmul.f32 %v796_v16, %v129_v15 }
  0xfd   :  { %v800_v21 = vpop.eup %799  ;;  %v142_v23 = vmul.f32 %v798_v18, %v130_v17 }
  0xfe   :  { %v802_v24 = vpop.eup %801  ;;  %v143_v25 = vmul.f32 %v800_v21, %v131_v19  ;;  %v149_v27 = vsel %vm145_vm1, %v97_v44, %v141_v20  ;;  %v779_v44 = vld [vmem:[%s1044_s5 + $0x60] sm:$0xff]  }
  0xff   :  { %v144_v26 = vmul.f32 %v802_v24, %v132_v22  ;;  %v150_v29 = vsel %vm146_vm3, %v99_v46, %v142_v23  ;;  %704 = vmatprep.subr.bf16.mxu0 %v779_v44  ;;  %v781_v46 = vld [vmem:[%s1044_s5 + $0x68] sm:$0xff]  }
 0x100   :  { %v151_v28 = vsel %vm147_vm2, %v101_v49, %v143_v25  ;;  %705 = vmatpush3.bf16.msra.mxu0 %v780_v45  ;;  %v784_v49 = vld [vmem:[%s1044_s5 + $0x30] sm:$0xff]  }
 0x101   :  { %v152_v30 = vsel %vm148_vm4, %v103_v52, %v144_v26  ;;  %v153_v31 = vpack.c.bf16 %v151_v28, %v149_v27  ;;  %706 = vmatprep.subr.bf16.mxu0 %v781_v46  ;;  %v187_v52 = vld [vmem:[%s1045_s4] sm:$0x3] }
 0x102   :  { %v154_v32 = vpack.c.bf16 %v152_v30, %v150_v29  ;;  %v192_v53 = vrot.slane %v187_v52, %v35_v38  ;;  %v196_v54 = vrot.slane %v187_v52, %v39_v40  ;;  %v679_v46 = vld [vmem:[%s1046_s6] ss:$0 sm:$0xff] }
 0x104   :  { %391 = vmatprep.mubr.bf16.mxu1 %v154_v32  ;;  %707 = vmatpush3.bf16.msra.mxu0 %v782_v47 }
 0x105   :  { %392 = vmatmul.mubr.bf16.vlgmr.msra.gmra.mrb[0].mxu1 %v153_v31  ;;  %708 = vmatprep.subr.bf16.mxu0 %v783_v48 }
 0x108   :  { %709 = vmatpush3.bf16.msra.mxu0 %v784_v49 }
 0x109   :  { %710 = vmatprep.subr.bf16.mxu0 %v785_v50 }
 0x10c   :  { %711 = vmatpush3.bf16.msra.mxu0 %v786_v51 }
 0x1d8   :  { %v393_v55 = vpop.f32.mrb[0].mxu1 }
 0x1d9   :  { %v394_v56 = vadd.f32 %v393_v55, %v192_v53  ;;  %v395_v57 = vpop.f32.mrb[1].mxu1 }
 0x1da   :  { %v396_v58 = vadd.f32 %v395_v57, %v196_v54  ;;  %v397_v59 = vpop.f32.mrb[2].mxu1 }
 0x1db   :  { %v402_v60 = vmin.f32 %v394_v56, 20.0  ;;  %v398_v61 = vadd.f32 %v397_v59, %v192_v53  ;;  %v399_v62 = vpop.f32.mrb[3].mxu1  ;;  %vm442_vm5 = vcmp.gt.f32.partialorder %v394_v56, 20.0 }
 0x1dc   :  { %v403_v63 = vmin.f32 %v396_v58, 20.0  ;;  %v400_v0 = vadd.f32 %v399_v62, %v196_v54  ;;  %vm443_vm7 = vcmp.gt.f32.partialorder %v396_v58, 20.0 }
 0x1dd   :  { %v406_v1 = vmul.f32 1.442695, %v402_v60  ;;  %v404_v2 = vmin.f32 %v398_v61, 20.0  ;;  %vm444_vm6 = vcmp.gt.f32.partialorder %v398_v61, 20.0 }
 0x1de   :  { %v408_v3 = vmul.f32 1.442695, %v403_v63  ;;  %v405_v4 = vmin.f32 %v400_v0, 20.0  ;;  %vm445_vm8 = vcmp.gt.f32.partialorder %v400_v0, 20.0 }
 0x1df   :  { %803 = vpow2.f32 %v406_v1  ;;  %v410_v5 = vmul.f32 1.442695, %v404_v2 }
 0x1e0   :  { %805 = vpow2.f32 %v408_v3  ;;  %v412_v38 = vmul.f32 1.442695, %v405_v4 }
 0x1e1   :  { %807 = vpow2.f32 %v410_v5 }
 0x1e2   :  { %809 = vpow2.f32 %v412_v38 }
 0x1e9   :  { %v804_v37 = vpop.eup %803 }
 0x1ea   :  { %v806_v40 = vpop.eup %805  ;;  %v414_v6 = vadd.f32 1.0, %v804_v37 }
 0x1eb   :  { %v808_v7 = vpop.eup %807  ;;  %v415_v8 = vadd.f32 1.0, %v806_v40 }
 0x1ec   :  { %v810_v9 = vpop.eup %809  ;;  %v418_v10 = vmul.f32 %v414_v6, %v414_v6  ;;  %v416_v11 = vadd.f32 1.0, %v808_v7 }
 0x1ed   :  { %v419_v12 = vmul.f32 %v415_v8, %v415_v8  ;;  %v417_v13 = vadd.f32 1.0, %v810_v9 }
 0x1ee   :  { %v430_v14 = vadd.f32 1.0, %v418_v10  ;;  %v420_v15 = vmul.f32 %v416_v11, %v416_v11  ;;  %v675_v20 = vadd.f32 -1.0, %v418_v10 }
 0x1ef   :  { %v431_v16 = vadd.f32 1.0, %v419_v12  ;;  %v421_v17 = vmul.f32 %v417_v13, %v417_v13  ;;  %v676_v21 = vadd.f32 -1.0, %v419_v12 }
 0x1f0   :  { %811 = vrcp.f32 %v430_v14  ;;  %v432_v18 = vadd.f32 1.0, %v420_v15  ;;  %v677_v22 = vadd.f32 -1.0, %v420_v15  ;;  %v426_v24 = vmul.f32 %v675_v20, %v394_v56 }
 0x1f1   :  { %813 = vrcp.f32 %v431_v16  ;;  %v433_v19 = vadd.f32 1.0, %v421_v17  ;;  %v678_v23 = vadd.f32 -1.0, %v421_v17  ;;  %v427_v26 = vmul.f32 %v676_v21, %v396_v58 }
 0x1f2   :  { %815 = vrcp.f32 %v432_v18  ;;  %v428_v29 = vmul.f32 %v677_v22, %v398_v61 }
 0x1f3   :  { %817 = vrcp.f32 %v433_v19  ;;  %v429_v31 = vmul.f32 %v678_v23, %v400_v0 }
 0x1fa   :  { %v812_v25 = vpop.eup %811 }
 0x1fb   :  { %v814_v27 = vpop.eup %813  ;;  %v438_v28 = vmul.f32 %v812_v25, %v426_v24 }
 0x1fc   :  { %v816_v30 = vpop.eup %815  ;;  %v439_v32 = vmul.f32 %v814_v27, %v427_v26 }
 0x1fd   :  { %v818_v33 = vpop.eup %817  ;;  %v440_v34 = vmul.f32 %v816_v30, %v428_v29  ;;  %v446_v36 = vsel %vm442_vm5, %v394_v56, %v438_v28 }
 0x1fe   :  { %v441_v35 = vmul.f32 %v818_v33, %v429_v31  ;;  %v447_v41 = vsel %vm443_vm7, %v396_v58, %v439_v32 }
 0x1ff   :  { %v448_v39 = vsel %vm444_vm6, %v398_v61, %v440_v34 }
 0x200   :  { %v449_v42 = vsel %vm445_vm8, %v400_v0, %v441_v35  ;;  %v450_v43 = vpack.c.bf16 %v448_v39, %v446_v36 }
 0x201   :  { %v451_v44 = vpack.c.bf16 %v449_v42, %v447_v41 }
 0x203   :  { %619 = vmatprep.mubr.bf16.mxu0 %v451_v44 }
 0x204   :  { %620 = vmatmul.mubr.bf16.vlgmr.msra.gmra.mrb[4].mxu0 %v450_v43 }
 0x2d7   :  { %v712_v45 = vpop.f32.mrb[4].mxu0 }
 0x2d8   :  { %v713_v47 = vpop.f32.mrb[5].mxu0 }
 0x2d9   :  { %v714_v48 = vadd.f32 %v713_v47, %v712_v45  ;;  %v715_v49 = vpop.f32.mrb[6].mxu0 }
 0x2da   :  { %v716_v50 = vpop.f32.mrb[7].mxu0 }
 0x2db   :  { %v622_v51 = vadd.f32 %v714_v48, %v679_v46  ;;  %v717_v52 = vadd.f32 %v716_v50, %v715_v49 }
 0x2dd   :  { %629 = vst.msk [vmem:[%s1047_s7] sm:$0xff] %vm628_vm9, %v622_v51  ;;  %v625_v53 = vadd.f32 %v717_v52, %v679_v46 }
 0x2df   :  { %630 = vst.msk [vmem:[%s1047_s7 + $0x8] sm:$0xff] %vm628_vm9, %v625_v53 }

</bundles_post_ra>
